<compile_context>
chip_gen: v7x
topology: tpu7x:2x2x1
jax: 0.10.0
libtpu: 0.0.40
codegen_flags: <defaults>
</compile_context>

<pallas_src>
import jax
import jax.numpy as jnp
from jax import lax
from jax.experimental import pallas as pl
from jax.experimental.pallas import tpu as pltpu

_HIDDEN = 72
_HIDDEN_PAD = 128  # pad hidden to a full vreg lane width
_BIAS_LANE = _HIDDEN  # padded lane reused as the constant-1 "bias" feature


def _policy_kernel(x_ref, w1_ref, b1_ref, wh_ref, out_ref):
    x = x_ref[...]                 # (TB, 3)
    w1 = w1_ref[...]               # (3, 128)

    # Trunk Linear(3,72)+ReLU as three VPU broadcast-FMAs (keeps MXU free).
    # b1 lane 72 holds 1.0, so after ReLU h[:, 72] == 1.0 exactly.
    h = (x[:, 0:1] * w1[0:1, :]
         + x[:, 1:2] * w1[1:2, :]
         + x[:, 2:3] * w1[2:3, :]
         + b1_ref[...])
    h = jnp.maximum(h, 0.0)        # (TB, 128); padded lanes 73..127 stay 0

    # Both heads fused into one matmul; head biases live in row 72 of wh
    # (picked up by the constant-1 lane of h), so no separate bias add.
    y = jnp.dot(h, wh_ref[...], preferred_element_type=jnp.float32)  # (TB, 2)

    # Column 0 = mean (identity); column 1 = std = softplus (beta=1, thr=20).
    sp = jnp.where(y > 20.0, y, jnp.log1p(jnp.exp(jnp.minimum(y, 20.0))))
    col = lax.broadcasted_iota(jnp.int32, y.shape, dimension=1)
    out_ref[...] = jnp.where(col == 0, y, sp)


def policy_forward(x, w1, b1, wm, bm, ws, bs, *, block_b=1024):
    """x: (B, 3) f32. Weights pre-transposed to (in, out). Returns (mean, std), each (B, 1)."""
    B = x.shape[0]
    f32 = jnp.float32
    x = x.astype(f32)

    pad_h = _HIDDEN_PAD - _HIDDEN

    # Trunk weights: zero-pad hidden 72 -> 128; plant constant 1.0 in bias
    # lane 72 so the head biases can ride the fused head matmul.
    w1p = jnp.pad(w1.astype(f32), ((0, 0), (0, pad_h)))                     # (3, 128)
    b1p = jnp.pad(b1.reshape(1, -1).astype(f32), ((0, 0), (0, pad_h)))      # (1, 128)
    b1p = b1p.at[0, _BIAS_LANE].set(1.0)

    # Fused head weights: rows 0..71 = [wm | ws], row 72 = [bm, bs], rest 0.
    w_heads = jnp.concatenate([wm, ws], axis=1).astype(f32)                 # (72, 2)
    whp = jnp.pad(w_heads, ((0, pad_h), (0, 0)))                            # (128, 2)
    whp = whp.at[_BIAS_LANE, 0].set(bm.reshape(()).astype(f32))
    whp = whp.at[_BIAS_LANE, 1].set(bs.reshape(()).astype(f32))

    # Batch tile: multiple of 8 sublanes; grid over batch for large B.
    tb = min(block_b, max(8, -(-B // 8) * 8))
    n_blocks = -(-B // tb)
    Bp = n_blocks * tb
    if Bp != B:
        x = jnp.pad(x, ((0, Bp - B), (0, 0)))

    out = pl.pallas_call(
        _policy_kernel,
        out_shape=jax.ShapeDtypeStruct((Bp, 2), f32),
        grid=(n_blocks,),
        in_specs=[
            pl.BlockSpec((tb, 3), lambda i: (i, 0)),            # x tile
            pl.BlockSpec((3, _HIDDEN_PAD), lambda i: (0, 0)),   # W1 (resident)
            pl.BlockSpec((1, _HIDDEN_PAD), lambda i: (0, 0)),   # b1 + const-1 lane (resident)
            pl.BlockSpec((_HIDDEN_PAD, 2), lambda i: (0, 0)),   # fused head W + biases
        ],
        out_specs=pl.BlockSpec((tb, 2), lambda i: (i, 0)),
        compiler_params=pltpu.CompilerParams(
            dimension_semantics=("parallel",),
        ),
    )(x, w1p, b1p, whp)

    out = out[:B]
    # Note: output last-dim is 2 (<128) -> masked stores, but per-row store
    # traffic (8 B) is dwarfed by the ~5 VPU vreg-ops/8 rows of the trunk, so
    # a lane-dense (2, TB) output layout would not move the bottleneck.
    return out[:, 0:1], out[:, 1:2]


def _reference(x, w1, b1, wm, bm, ws, bs):
    h = jnp.maximum(x @ w1 + b1, 0.0)
    mean = h @ wm + bm
    s = h @ ws + bs
    std = jnp.where(s > 20.0, s, jnp.log1p(jnp.exp(jnp.minimum(s, 20.0))))
    return mean, std


if __name__ == "__main__":
    key = jax.random.PRNGKey(0)
    k_x, k_w1, k_b1, k_wm, k_bm, k_ws, k_bs = jax.random.split(key, 7)

    B = 8  # small batch of pendulum states (cos(theta), sin(theta), theta_dot)
    x = jax.random.normal(k_x, (B, 3), dtype=jnp.float32)

    # Deterministic parameter init (shapes from the module __init__),
    # stored as (in, out) = transposed torch.nn.Linear weights.
    w1 = jax.random.normal(k_w1, (3, 72), dtype=jnp.float32) * 0.3
    b1 = jax.random.normal(k_b1, (1, 72), dtype=jnp.float32) * 0.1
    wm = jax.random.normal(k_wm, (72, 1), dtype=jnp.float32) * 0.1
    bm = jax.random.normal(k_bm, (1, 1), dtype=jnp.float32) * 0.1
    ws = jax.random.normal(k_ws, (72, 1), dtype=jnp.float32) * 0.1
    bs = jax.random.normal(k_bs, (1, 1), dtype=jnp.float32) * 0.1

    mean, std = policy_forward(x, w1, b1, wm, bm, ws, bs)
    jax.block_until_ready((mean, std))

    ref_mean, ref_std = _reference(x, w1, b1, wm, bm, ws, bs)
    assert mean.shape == (B, 1) and std.shape == (B, 1)
    assert jnp.allclose(mean, ref_mean, atol=1e-5, rtol=1e-5)
    assert jnp.allclose(std, ref_std, atol=1e-5, rtol=1e-5)
    assert bool(jnp.all(std > 0.0))  # softplus output is strictly positive

    # Also check a non-multiple-of-8, multi-tile-capable batch for padding paths.
    B2 = 37
    x2 = jax.random.normal(jax.random.PRNGKey(1), (B2, 3), dtype=jnp.float32)
    m2, s2 = policy_forward(x2, w1, b1, wm, bm, ws, bs, block_b=16)
    jax.block_until_ready((m2, s2))
    rm2, rs2 = _reference(x2, w1, b1, wm, bm, ws, bs)
    assert jnp.allclose(m2, rm2, atol=1e-5, rtol=1e-5)
    assert jnp.allclose(s2, rs2, atol=1e-5, rtol=1e-5)

    print("KERNEL_OK")
</pallas_src>

<mosaic_0001>
module attributes {stable_mosaic.version = 11 : i64} {
  func.func @_policy_kernel(%arg0: i32, %arg1: memref<8x3xf32, #tpu.memory_space<vmem>>, %arg2: memref<3x128xf32, #tpu.memory_space<vmem>>, %arg3: memref<1x128xf32, #tpu.memory_space<vmem>>, %arg4: memref<128x2xf32, #tpu.memory_space<vmem>>, %arg5: memref<8x2xf32, #tpu.memory_space<vmem>>) attributes {dimension_semantics = [#tpu.dimension_semantics<parallel>], iteration_bounds = array<i64: 1>, scalar_prefetch = 0 : i64, scratch_operands = 0 : i64, tpu.core_type = #tpu.core_type<tc>, window_params = [{transform_indices = @transform_0, window_bounds = array<i64: 8, 3>}, {pipeline_mode = #tpu.pipeline_mode<synchronous>, transform_indices = @transform_1, window_bounds = array<i64: 3, 128>}, {pipeline_mode = #tpu.pipeline_mode<synchronous>, transform_indices = @transform_2, window_bounds = array<i64: 1, 128>}, {pipeline_mode = #tpu.pipeline_mode<synchronous>, transform_indices = @transform_3, window_bounds = array<i64: 128, 2>}, {transform_indices = @transform_4, window_bounds = array<i64: 8, 2>}]} {
    %c0 = arith.constant 0 : index
    %c0_0 = arith.constant 0 : index
    %0 = vector.load %arg1[%c0, %c0_0] : memref<8x3xf32, #tpu.memory_space<vmem>>, vector<8x3xf32>
    %c0_1 = arith.constant 0 : index
    %c0_2 = arith.constant 0 : index
    %1 = vector.load %arg2[%c0_1, %c0_2] : memref<3x128xf32, #tpu.memory_space<vmem>>, vector<3x128xf32>
    %2 = vector.extract_strided_slice %0 {offsets = [0, 0], sizes = [8, 1], strides = [1, 1]} : vector<8x3xf32> to vector<8x1xf32>
    %3 = vector.extract_strided_slice %1 {offsets = [0, 0], sizes = [1, 128], strides = [1, 1]} : vector<3x128xf32> to vector<1x128xf32>
    %4 = vector.broadcast %2 : vector<8x1xf32> to vector<8x128xf32>
    %5 = vector.broadcast %3 : vector<1x128xf32> to vector<8x128xf32>
    %6 = arith.mulf %4, %5 : vector<8x128xf32>
    %7 = vector.extract_strided_slice %0 {offsets = [0, 1], sizes = [8, 1], strides = [1, 1]} : vector<8x3xf32> to vector<8x1xf32>
    %8 = vector.extract_strided_slice %1 {offsets = [1, 0], sizes = [1, 128], strides = [1, 1]} : vector<3x128xf32> to vector<1x128xf32>
    %9 = vector.broadcast %7 : vector<8x1xf32> to vector<8x128xf32>
    %10 = vector.broadcast %8 : vector<1x128xf32> to vector<8x128xf32>
    %11 = arith.mulf %9, %10 : vector<8x128xf32>
    %12 = arith.addf %6, %11 : vector<8x128xf32>
    %13 = vector.extract_strided_slice %0 {offsets = [0, 2], sizes = [8, 1], strides = [1, 1]} : vector<8x3xf32> to vector<8x1xf32>
    %14 = vector.extract_strided_slice %1 {offsets = [2, 0], sizes = [1, 128], strides = [1, 1]} : vector<3x128xf32> to vector<1x128xf32>
    %15 = vector.broadcast %13 : vector<8x1xf32> to vector<8x128xf32>
    %16 = vector.broadcast %14 : vector<1x128xf32> to vector<8x128xf32>
    %17 = arith.mulf %15, %16 : vector<8x128xf32>
    %18 = arith.addf %12, %17 : vector<8x128xf32>
    %c0_3 = arith.constant 0 : index
    %c0_4 = arith.constant 0 : index
    %19 = vector.load %arg3[%c0_3, %c0_4] : memref<1x128xf32, #tpu.memory_space<vmem>>, vector<1x128xf32>
    %20 = vector.broadcast %19 : vector<1x128xf32> to vector<8x128xf32>
    %21 = arith.addf %18, %20 : vector<8x128xf32>
    %cst = arith.constant 0.000000e+00 : f32
    %22 = vector.broadcast %cst : f32 to vector<8x128xf32>
    %23 = arith.maximumf %21, %22 : vector<8x128xf32>
    %c0_5 = arith.constant 0 : index
    %c0_6 = arith.constant 0 : index
    %24 = vector.load %arg4[%c0_5, %c0_6] : memref<128x2xf32, #tpu.memory_space<vmem>>, vector<128x2xf32>
    %cst_7 = arith.constant dense<0.000000e+00> : vector<8x2xf32>
    %25 = tpu.matmul %23, %24, %cst_7 {dimension_numbers = #tpu.dot_dimension_numbers<[1], [0], [0], [1], [0, 0, 1, 1], [], []>} : vector<8x128xf32>, vector<128x2xf32>, vector<8x2xf32> -> vector<8x2xf32>
    %cst_8 = arith.constant 2.000000e+01 : f32
    %26 = vector.broadcast %cst_8 : f32 to vector<8x2xf32>
    %27 = arith.cmpf ogt, %25, %26 : vector<8x2xf32>
    %cst_9 = arith.constant 2.000000e+01 : f32
    %28 = vector.broadcast %cst_9 : f32 to vector<8x2xf32>
    %29 = arith.minimumf %25, %28 : vector<8x2xf32>
    %30 = math.exp %29 : vector<8x2xf32>
    %31 = math.log1p %30 : vector<8x2xf32>
    %32 = arith.select %27, %25, %31 : vector<8x2xi1>, vector<8x2xf32>
    %33 = tpu.iota {dimensions = array<i32: 1>} : vector<8x2xi32>
    %c0_i32 = arith.constant 0 : i32
    %34 = vector.broadcast %c0_i32 : i32 to vector<8x2xi32>
    %35 = arith.cmpi eq, %33, %34 : vector<8x2xi32>
    %36 = arith.select %35, %25, %32 : vector<8x2xi1>, vector<8x2xf32>
    %c0_10 = arith.constant 0 : index
    %c0_11 = arith.constant 0 : index
    %37 = vector.load %arg5[%c0_10, %c0_11] : memref<8x2xf32, #tpu.memory_space<vmem>>, vector<8x2xf32>
    tpu.vector_store %arg5[%c0_10, %c0_11], %36 {strides = array<i32>} : memref<8x2xf32, #tpu.memory_space<vmem>>, vector<8x2xf32>,
    return
  }
  func.func @transform_0(%arg0: i32) -> (i32, i32) {
    %c0_i32 = arith.constant 0 : i32
    %c0_i32_0 = arith.constant 0 : i32
    return %arg0, %c0_i32 : i32, i32
  }
  func.func @transform_1(%arg0: i32) -> (i32, i32) {
    %c0_i32 = arith.constant 0 : i32
    %c0_i32_0 = arith.constant 0 : i32
    %c0_i32_1 = arith.constant 0 : i32
    return %c0_i32, %c0_i32_0 : i32, i32
  }
  func.func @transform_2(%arg0: i32) -> (i32, i32) {
    %c0_i32 = arith.constant 0 : i32
    %c0_i32_0 = arith.constant 0 : i32
    %c0_i32_1 = arith.constant 0 : i32
    return %c0_i32, %c0_i32_0 : i32, i32
  }
  func.func @transform_3(%arg0: i32) -> (i32, i32) {
    %c0_i32 = arith.constant 0 : i32
    %c0_i32_0 = arith.constant 0 : i32
    %c0_i32_1 = arith.constant 0 : i32
    return %c0_i32, %c0_i32_0 : i32, i32
  }
  func.func @transform_4(%arg0: i32) -> (i32, i32) {
    %c0_i32 = arith.constant 0 : i32
    %c0_i32_0 = arith.constant 0 : i32
    return %arg0, %c0_i32 : i32, i32
  }
}

</mosaic_0001>

<bundles_post_ra>
// kernel: tpu_custom_call.1
= control target key start
LH: loop header
LB: loop body
LE: loop exit
PB: predicated region body
PF: predicated region fallthrough
CT: control target
= control target key end

     0   :  { %v259_v0 = vmov 0   ;;  %v260_v2 = vmov 2   ;;  %v261_v8 = vmov 0.0|0.0   ;;  %v262_v12 = vmov 1   ;;  %s350_s0 = inlined_call_operand.vmem [shape: f32[8,3], index: 0, kind: input, shape index: {}]   ;;  %s351_s3 = inlined_call_operand.vmem [shape: f32[128,2], index: 3, kind: input, shape index: {}]   ;;  %s352_s1 = inlined_call_operand.vmem [shape: f32[3,128], index: 1, kind: input, shape index: {}]   ;;  %s353_s2 = inlined_call_operand.vmem [shape: f32[1,128], index: 2, kind: input, shape index: {}]   ;;  %s354_s4 = inlined_call_operand.vmem [shape: f32[8,2], index: 4, kind: output, shape index: {}]  }
   0x1   :  { %251 = vset.pattern.permute.xlu0 %v259_v0  ;;  %v17_v1 = vld [vmem:[%s350_s0] sm:$0xff]  ;;  %253 = vset.pattern.permute.xlu1 %v260_v2  ;;  %v59_v4 = vld [vmem:[%s351_s3 + $0x8] sm:$0xff]  ;;  %v60_v6 = vld [vmem:[%s351_s3 + $0x10] sm:$0xff]  ;;  %vm263_vm0 = vmmov 0   ;;  %v264_v17 = vmov 0.0   ;;  %v24_v30 = vlaneseq  ;;  %vm162_vm4 = vcmask 15360  }
   0x2   :  { %v58_v3 = vld [vmem:[%s351_s3] sm:$0xff]  ;;  %21 = vperm.xlu0 %251, %v17_v1   ;;  %40 = vperm.xlu1 %253, %v17_v1   ;;  %v61_v7 = vld [vmem:[%s351_s3 + $0x18] sm:$0xff]  ;;  %v63_v11 = vld [vmem:[%s351_s3 + $0x28] sm:$0xff] }
   0x3   :  { %v222_v5 = vpack.c.bf16 %v59_v4, %v58_v3  ;;  %221 = vmatprep.subr.bf16.mxu0 %v261_v8  ;;  %v225_v9 = vpack.c.bf16 %v61_v7, %v60_v6  ;;  %v62_v10 = vld [vmem:[%s351_s3 + $0x20] sm:$0xff]  ;;  %v64_v14 = vld [vmem:[%s351_s3 + $0x30] sm:$0xff]  ;;  %v65_v15 = vld [vmem:[%s351_s3 + $0x38] sm:$0xff]  ;;  %218 = vmatprep.mubr.msk.f32.mxu0 %vm263_vm0, %v264_v17  ;;  %v25_v31 = vshrl.u32 %v24_v30, 7  ;;  %v159_v59 = vand.u32 127, %v24_v30 }
   0x4   :  { %v228_v13 = vpack.c.bf16 %v63_v11, %v62_v10  ;;  %v231_v16 = vpack.c.bf16 %v65_v15, %v64_v14  ;;  %v66_v18 = vld [vmem:[%s351_s3 + $0x40] sm:$0xff]  ;;  %v67_v19 = vld [vmem:[%s351_s3 + $0x48] sm:$0xff]  ;;  %v68_v21 = vld [vmem:[%s351_s3 + $0x50] sm:$0xff] }
   0x5   :  { %223 = vmatpush3.bf16.msra.mxu0 %v222_v5  ;;  %v234_v20 = vpack.c.bf16 %v67_v19, %v66_v18  ;;  %v69_v22 = vld [vmem:[%s351_s3 + $0x58] sm:$0xff]  ;;  %v70_v24 = vld [vmem:[%s351_s3 + $0x60] sm:$0xff]  ;;  %v71_v25 = vld [vmem:[%s351_s3 + $0x68] sm:$0xff]  ;;  %v26_v32 = vsub.s32 0, %v25_v31  ;;  %v35_v33 = vsub.s32 1, %v25_v31  ;;  %v45_v34 = vsub.s32 2, %v25_v31 }
   0x6   :  { %224 = vmatprep.subr.bf16.mxu0 %v261_v8  ;;  %252 = vset.pattern.permute.xlu0 %v262_v12  ;;  %v237_v23 = vpack.c.bf16 %v69_v22, %v68_v21  ;;  %v240_v26 = vpack.c.bf16 %v71_v25, %v70_v24  ;;  %v72_v27 = vld [vmem:[%s351_s3 + $0x70] sm:$0xff]  ;;  %v73_v28 = vld [vmem:[%s351_s3 + $0x78] sm:$0xff]  ;;  %v18_v35 = vld [vmem:[%s352_s1] sm:$0x7]  ;;  %vm160_vm2 = vcmp.eq.s32.totalorder %v159_v59, 0 }
   0x7   :  { %30 = vperm.xlu0 %252, %v17_v1   ;;  %v243_v29 = vpack.c.bf16 %v73_v28, %v72_v27  ;;  %v27_v37 = vrot.slane %v18_v35, %v26_v32  ;;  %v36_v38 = vrot.slane %v18_v35, %v35_v33  ;;  %v46_v39 = vrot.slane %v18_v35, %v45_v34  ;;  %v168_v46 = vld [vmem:[%s353_s2] ss:$0 sm:$0xff] }
   0x9   :  { %226 = vmatpush3.bf16.msra.mxu0 %v225_v9 }
   0xa   :  { %227 = vmatprep.subr.bf16.mxu0 %v261_v8 }
   0xb   :  { %254 = vset.pattern.permute.xlu0 %v260_v2 }
   0xd   :  { %229 = vmatpush3.bf16.msra.mxu0 %v228_v13 }
   0xe   :  { %230 = vmatprep.subr.bf16.mxu0 %v261_v8 }
  0x11   :  { %232 = vmatpush3.bf16.msra.mxu0 %v231_v16 }
  0x12   :  { %233 = vmatprep.subr.bf16.mxu0 %v261_v8 }
  0x15   :  { %235 = vmatpush3.bf16.msra.mxu0 %v234_v20 }
  0x16   :  { %236 = vmatprep.subr.bf16.mxu0 %v261_v8 }
  0x19   :  { %238 = vmatpush3.bf16.msra.mxu0 %v237_v23 }
  0x1a   :  { %239 = vmatprep.subr.bf16.mxu0 %v261_v8 }
  0x1d   :  { %241 = vmatpush3.bf16.msra.mxu0 %v240_v26 }
  0x1e   :  { %242 = vmatprep.subr.bf16.mxu0 %v261_v8 }
  0x21   :  { %244 = vmatpush3.bf16.msra.mxu0 %v243_v29 }
  0x81   :  { %v22_v36 = vpop.permute.xlu0 %21  ;;  %v41_v40 = vpop.permute.xlu1 %40 }
  0x82   :  { %v28_v42 = vmul.f32 %v27_v37, %v22_v36  ;;  %v47_v44 = vmul.f32 %v46_v39, %v41_v40 }
  0x86   :  { %v31_v41 = vpop.permute.xlu0 %30 }
  0x87   :  { %v37_v43 = vmul.f32 %v36_v38, %v31_v41 }
  0x89   :  { %v38_v45 = vadd.f32 %v37_v43, %v28_v42 }
  0x8b   :  { %v48_v47 = vadd.f32 %v47_v44, %v38_v45 }
  0x8d   :  { %v56_v48 = vadd.f32 %v168_v46, %v48_v47 }
  0x8f   :  { %v57_v49 = vmax.f32 %v56_v48, 0.0 }
  0x91   :  { %219 = vmatmul.mubr.f32.vlgmr.msra.gmra.mrb[0].mxu0 %v57_v49 }
 0x164   :  { %v140_v50 = vpop.f32.mrb[0].mxu0 }
 0x165   :  { %v145_v51 = vmin.f32 %v140_v50, 20.0  ;;  %v220_v52 = vpop.f32.mrb[1].mxu0  ;;  %vm144_vm3 = vcmp.gt.f32.partialorder %v140_v50, 20.0 }
 0x167   :  { %v146_v53 = vmul.f32 1.442695, %v145_v51 }
 0x169   :  { %255 = vpow2.f32 %v146_v53 }
 0x173   :  { %v256_v54 = vpop.eup %255 }
 0x174   :  { %v148_v55 = vadd.f32 1.0, %v256_v54  ;;  %v151_v56 = vmul.f32 -0.5, %v256_v54  ;;  %v154_v58 = vand.u32 2147483647, %v256_v54 }
 0x176   :  { %257 = vlog2.f32 %v148_v55  ;;  %v152_v57 = vadd.f32 1.0, %v151_v56  ;;  %vm155_vm1 = vcmp.lt.f32.partialorder %v154_v58, 0.0004427343 }
 0x178   :  { %v153_v62 = vmul.f32 %v256_v54, %v152_v57 }
 0x180   :  { %v258_v60 = vpop.eup %257 }
 0x181   :  { %v150_v61 = vmul.f32 0.6931472, %v258_v60 }
 0x183   :  { %v156_v63 = vsel %vm155_vm1, %v153_v62, %v150_v61 }
 0x184   :  { %v157_v0 = vsel %vm144_vm3, %v140_v50, %v156_v63 }
 0x185   :  { %v161_v1 = vsel %vm160_vm2, %v140_v50, %v157_v0 }
 0x186   :  { %163 = vst.msk [vmem:[%s354_s4] sm:$0xff] %vm162_vm4, %v161_v1 }

</bundles_post_ra>
